<compile_context>
chip_gen: v7x
topology: tpu7x:2x2x1
jax: 0.10.0
libtpu: 0.0.40
codegen_flags: <defaults>
</compile_context>

<pallas_src>
import functools

import jax
import jax.numpy as jnp
import numpy as np
from jax.experimental import pallas as pl
from jax.experimental.pallas import tpu as pltpu


def _dice_partial_kernel(score_ref, tgt_ref, inter_ref, y_ref, z_ref,
                         *, do_softmax, masked):
    j = pl.program_id(1)

    @pl.when(j == 0)
    def _():
        inter_ref[...] = jnp.zeros_like(inter_ref)
        y_ref[...] = jnp.zeros_like(y_ref)
        z_ref[...] = jnp.zeros_like(z_ref)

    s = score_ref[...].astype(jnp.float32)             # (C, TM)
    t = tgt_ref[...]                                   # (1, TM) int32; -1 in padded lanes

    if do_softmax:
        # Hand-rolled numerically-stable softmax over the class (sublane) dim;
        # the normalisation divide runs on the EUP via approximate reciprocal.
        m = jnp.max(s, axis=0, keepdims=True)          # (1, TM)
        e = jnp.exp(s - m)                              # (C, TM)
        denom = jnp.sum(e, axis=0, keepdims=True)       # (1, TM)
        s = e * pl.reciprocal(denom, approx=True)

    if masked:
        # Zero out padded lanes (softmax of a zero-padded column is 1/C).
        s = s * (t >= 0).astype(jnp.float32)

    cls = jax.lax.broadcasted_iota(jnp.int32, s.shape, 0)   # (C, TM)
    onehot = (t == cls).astype(jnp.float32)                 # pad lanes (-1) match no class

    # Per-class partial sums over this tile, accumulated in the resident
    # output block (one block per image, carried across the tile axis).
    inter_ref[...] += jnp.sum(s * onehot, axis=1, keepdims=True)   # (C, 1)
    y_ref[...]     += jnp.sum(onehot,     axis=1, keepdims=True)   # one-hot is idempotent
    z_ref[...]     += jnp.sum(s * s,      axis=1, keepdims=True)


def _choose_tile(hw, c):
    """Lane tile along flattened H*W: multiple of 128, bounded by a VMEM
    budget, and chosen to minimise padding."""
    budget = 8 * 1024 * 1024                  # double-buffered input budget (bytes)
    per_lane = 2 * (c + 1) * 4                # 2 bufs * (C score rows + 1 target row) * 4B
    tm_max = max(512, (min(16384, budget // per_lane) // 512) * 512)
    n_tiles = pl.cdiv(hw, tm_max)
    tm = pl.cdiv(pl.cdiv(hw, n_tiles), 128) * 128
    return tm, n_tiles


def dice_loss(inputs, target, weight=None, softmax=False):
    """Pallas implementation of DiceLoss.forward.

    inputs: (N, C, H, W) float scores (NCHW).
    target: (N, H, W) integer class labels in [0, C).
    """
    N, C, H, W = inputs.shape
    HW = H * W

    # Free reshapes of contiguous NCHW -- no transpose, no extra HBM traffic.
    score = inputs.reshape(N, C, HW)
    tgt = target.reshape(N, 1, HW).astype(jnp.int32)

    TM, n_tiles = _choose_tile(HW, C)
    HW_pad = TM * n_tiles
    masked = HW_pad != HW
    if masked:
        score = jnp.pad(score, ((0, 0), (0, 0), (0, HW_pad - HW)))
        tgt = jnp.pad(tgt, ((0, 0), (0, 0), (0, HW_pad - HW)), constant_values=-1)

    part_shape = jax.ShapeDtypeStruct((N, C, 1), jnp.float32)
    part_spec = pl.BlockSpec((None, C, 1), lambda n, j: (n, 0, 0))

    inter_p, y_p, z_p = pl.pallas_call(
        functools.partial(_dice_partial_kernel, do_softmax=softmax, masked=masked),
        out_shape=(part_shape, part_shape, part_shape),
        grid_spec=pltpu.PrefetchScalarGridSpec(
            num_scalar_prefetch=0,
            grid=(N, n_tiles),
            in_specs=[
                pl.BlockSpec((None, C, TM), lambda n, j: (n, 0, j)),   # score tile
                pl.BlockSpec((None, 1, TM), lambda n, j: (n, 0, j)),   # target tile
            ],
            out_specs=[part_spec, part_spec, part_spec],
        ),
        compiler_params=pltpu.CompilerParams(
            dimension_semantics=("parallel", "arbitrary"),
            vmem_limit_bytes=32 * 1024 * 1024,
        ),
    )(score, tgt)

    # Tiny per-class finish (C numbers) in plain JAX.
    intersect = jnp.sum(inter_p[..., 0], axis=0)   # (C,)
    y_sum = jnp.sum(y_p[..., 0], axis=0)           # (C,)
    z_sum = jnp.sum(z_p[..., 0], axis=0)           # (C,)

    if weight is None:
        weight = [1.0] * C
    w = jnp.asarray(weight, dtype=jnp.float32)

    smooth = 1e-5
    dice = 1.0 - (2.0 * intersect + smooth) / (z_sum + y_sum + smooth)
    return jnp.sum(dice * w) / C
    # TODO(synk): the PyTorch module also builds a `class_wise_dice` Python
    # list via .item() (host sync, not part of the returned loss); omitted.


def _dice_loss_ref(inputs, target, weight=None, softmax=False):
    """Pure-JAX reference mirroring the PyTorch module."""
    N, C, H, W = inputs.shape
    if softmax:
        inputs = jax.nn.softmax(inputs, axis=1)
    onehot = (target[:, None, :, :] == jnp.arange(C)[None, :, None, None]
              ).astype(jnp.float32)
    if weight is None:
        weight = [1.0] * C
    smooth = 1e-5
    loss = 0.0
    for i in range(C):
        s = inputs[:, i].astype(jnp.float32)
        t = onehot[:, i]
        intersect = jnp.sum(s * t)
        y_sum = jnp.sum(t * t)
        z_sum = jnp.sum(s * s)
        dice = 1.0 - (2 * intersect + smooth) / (z_sum + y_sum + smooth)
        loss = loss + dice * weight[i]
    return loss / C


if __name__ == "__main__":
    key = jax.random.PRNGKey(0)
    k1, k2, k3, k4 = jax.random.split(key, 4)

    N, C, H, W = 2, 4, 16, 16
    x = jax.random.normal(k1, (N, C, H, W), dtype=jnp.float32)
    tgt = jax.random.randint(k2, (N, H, W), 0, C, dtype=jnp.int32)

    # softmax=True path (as commonly used in training.py).
    loss = dice_loss(x, tgt, weight=None, softmax=True)
    loss = jax.block_until_ready(loss)
    ref = _dice_loss_ref(x, tgt, weight=None, softmax=True)
    # Approximate (EUP) reciprocal in the softmax normalisation -> slightly
    # looser tolerance than exact-divide.
    np.testing.assert_allclose(np.asarray(loss), np.asarray(ref),
                               rtol=2e-3, atol=2e-3)

    # no-softmax + explicit-weight path (exact math everywhere).
    loss2 = dice_loss(x, tgt, weight=[1.0, 2.0, 0.5, 1.0], softmax=False)
    loss2 = jax.block_until_ready(loss2)
    ref2 = _dice_loss_ref(x, tgt, weight=[1.0, 2.0, 0.5, 1.0], softmax=False)
    np.testing.assert_allclose(np.asarray(loss2), np.asarray(ref2),
                               rtol=1e-5, atol=1e-5)

    # non-128-multiple spatial size -> exercises the padding + lane-mask path.
    H3, W3 = 15, 15
    x3 = jax.random.normal(k3, (N, C, H3, W3), dtype=jnp.float32)
    tgt3 = jax.random.randint(k4, (N, H3, W3), 0, C, dtype=jnp.int32)
    loss3 = dice_loss(x3, tgt3, weight=None, softmax=True)
    loss3 = jax.block_until_ready(loss3)
    ref3 = _dice_loss_ref(x3, tgt3, weight=None, softmax=True)
    np.testing.assert_allclose(np.asarray(loss3), np.asarray(ref3),
                               rtol=2e-3, atol=2e-3)

    print("KERNEL_OK")
</pallas_src>

<mosaic_0001>
module attributes {stable_mosaic.version = 11 : i64} {
  func.func @_dice_partial_kernel(%arg0: i32, %arg1: i32, %arg2: memref<1x4x256xf32, #tpu.memory_space<vmem>>, %arg3: memref<1x1x256xi32, #tpu.memory_space<vmem>>, %arg4: memref<1x4x1xf32, #tpu.memory_space<vmem>>, %arg5: memref<1x4x1xf32, #tpu.memory_space<vmem>>, %arg6: memref<1x4x1xf32, #tpu.memory_space<vmem>>) attributes {dimension_semantics = [#tpu.dimension_semantics<parallel>, #tpu.dimension_semantics<arbitrary>], iteration_bounds = array<i64: 2, 1>, scalar_prefetch = 0 : i64, scratch_operands = 0 : i64, tpu.core_type = #tpu.core_type<tc>, window_params = [{transform_indices = @transform_0, window_bounds = array<i64: 1, 4, 256>}, {transform_indices = @transform_1, window_bounds = array<i64: 1, 1, 256>}, {transform_indices = @transform_2, window_bounds = array<i64: 1, 4, 1>}, {transform_indices = @transform_3, window_bounds = array<i64: 1, 4, 1>}, {transform_indices = @transform_4, window_bounds = array<i64: 1, 4, 1>}]} {
    %c0_i32 = arith.constant 0 : i32
    %0 = arith.cmpi eq, %arg1, %c0_i32 : i32
    %1 = arith.extui %0 : i1 to i32
    %c0_i32_0 = arith.constant 0 : i32
    %2 = arith.cmpi ne, %1, %c0_i32_0 : i32
    scf.if %2 {
      %cst_28 = arith.constant 0.000000e+00 : f32
      %48 = vector.broadcast %cst_28 : f32 to vector<4x1xf32>
      %c0_29 = arith.constant 0 : index
      %c0_30 = arith.constant 0 : index
      %c0_31 = arith.constant 0 : index
      %49 = vector.load %arg4[%c0_29, %c0_30, %c0_31] : memref<1x4x1xf32, #tpu.memory_space<vmem>>, vector<1x4x1xf32>
      %50 = vector.shape_cast %49 : vector<1x4x1xf32> to vector<4x1xf32>
      %51 = vector.shape_cast %48 : vector<4x1xf32> to vector<1x4x1xf32>
      tpu.vector_store %arg4[%c0_29, %c0_30, %c0_31], %51 {strides = array<i32>} : memref<1x4x1xf32, #tpu.memory_space<vmem>>, vector<1x4x1xf32>,
      %cst_32 = arith.constant 0.000000e+00 : f32
      %52 = vector.broadcast %cst_32 : f32 to vector<4x1xf32>
      %c0_33 = arith.constant 0 : index
      %c0_34 = arith.constant 0 : index
      %c0_35 = arith.constant 0 : index
      %53 = vector.load %arg5[%c0_33, %c0_34, %c0_35] : memref<1x4x1xf32, #tpu.memory_space<vmem>>, vector<1x4x1xf32>
      %54 = vector.shape_cast %53 : vector<1x4x1xf32> to vector<4x1xf32>
      %55 = vector.shape_cast %52 : vector<4x1xf32> to vector<1x4x1xf32>
      tpu.vector_store %arg5[%c0_33, %c0_34, %c0_35], %55 {strides = array<i32>} : memref<1x4x1xf32, #tpu.memory_space<vmem>>, vector<1x4x1xf32>,
      %cst_36 = arith.constant 0.000000e+00 : f32
      %56 = vector.broadcast %cst_36 : f32 to vector<4x1xf32>
      %c0_37 = arith.constant 0 : index
      %c0_38 = arith.constant 0 : index
      %c0_39 = arith.constant 0 : index
      %57 = vector.load %arg6[%c0_37, %c0_38, %c0_39] : memref<1x4x1xf32, #tpu.memory_space<vmem>>, vector<1x4x1xf32>
      %58 = vector.shape_cast %57 : vector<1x4x1xf32> to vector<4x1xf32>
      %59 = vector.shape_cast %56 : vector<4x1xf32> to vector<1x4x1xf32>
      tpu.vector_store %arg6[%c0_37, %c0_38, %c0_39], %59 {strides = array<i32>} : memref<1x4x1xf32, #tpu.memory_space<vmem>>, vector<1x4x1xf32>,
    } else {
    }
    %c0 = arith.constant 0 : index
    %c0_1 = arith.constant 0 : index
    %c0_2 = arith.constant 0 : index
    %3 = vector.load %arg2[%c0, %c0_1, %c0_2] : memref<1x4x256xf32, #tpu.memory_space<vmem>>, vector<1x4x256xf32>
    %4 = vector.shape_cast %3 : vector<1x4x256xf32> to vector<4x256xf32>
    %c0_3 = arith.constant 0 : index
    %c0_4 = arith.constant 0 : index
    %c0_5 = arith.constant 0 : index
    %5 = vector.load %arg3[%c0_3, %c0_4, %c0_5] : memref<1x1x256xi32, #tpu.memory_space<vmem>>, vector<1x1x256xi32>
    %6 = vector.shape_cast %5 : vector<1x1x256xi32> to vector<1x256xi32>
    %cst = arith.constant dense<0xFF800000> : vector<256xf32>
    %7 = vector.multi_reduction <maximumf>, %4, %cst [0] : vector<4x256xf32> to vector<256xf32>
    %8 = vector.shape_cast %7 : vector<256xf32> to vector<1x256xf32>
    %9 = vector.broadcast %8 : vector<1x256xf32> to vector<4x256xf32>
    %10 = arith.subf %4, %9 : vector<4x256xf32>
    %11 = math.exp %10 : vector<4x256xf32>
    %cst_6 = arith.constant dense<0.000000e+00> : vector<256xf32>
    %12 = vector.multi_reduction <add>, %11, %cst_6 [0] : vector<4x256xf32> to vector<256xf32>
    %13 = vector.shape_cast %12 : vector<256xf32> to vector<1x256xf32>
    %14 = tpu.reciprocal %13 {approx = true} : vector<1x256xf32> -> vector<1x256xf32>
    %15 = vector.broadcast %14 : vector<1x256xf32> to vector<4x256xf32>
    %16 = arith.mulf %11, %15 : vector<4x256xf32>
    %17 = tpu.iota {dimensions = array<i32: 0>} : vector<4x256xi32>
    %18 = vector.broadcast %6 : vector<1x256xi32> to vector<4x256xi32>
    %19 = arith.cmpi eq, %18, %17 : vector<4x256xi32>
    %20 = arith.extui %19 : vector<4x256xi1> to vector<4x256xi32>
    %21 = arith.sitofp %20 : vector<4x256xi32> to vector<4x256xf32>
    %c0_7 = arith.constant 0 : index
    %c0_8 = arith.constant 0 : index
    %c0_9 = arith.constant 0 : index
    %22 = vector.load %arg4[%c0_7, %c0_8, %c0_9] : memref<1x4x1xf32, #tpu.memory_space<vmem>>, vector<1x4x1xf32>
    %23 = vector.shape_cast %22 : vector<1x4x1xf32> to vector<4x1xf32>
    %24 = arith.mulf %16, %21 : vector<4x256xf32>
    %cst_10 = arith.constant dense<0.000000e+00> : vector<4xf32>
    %25 = vector.multi_reduction <add>, %24, %cst_10 [1] : vector<4x256xf32> to vector<4xf32>
    %26 = vector.shape_cast %25 : vector<4xf32> to vector<4x1xf32>
    %27 = arith.addf %23, %26 : vector<4x1xf32>
    %c0_11 = arith.constant 0 : index
    %c0_12 = arith.constant 0 : index
    %c0_13 = arith.constant 0 : index
    %28 = vector.load %arg4[%c0_11, %c0_12, %c0_13] : memref<1x4x1xf32, #tpu.memory_space<vmem>>, vector<1x4x1xf32>
    %29 = vector.shape_cast %28 : vector<1x4x1xf32> to vector<4x1xf32>
    %30 = vector.shape_cast %27 : vector<4x1xf32> to vector<1x4x1xf32>
    tpu.vector_store %arg4[%c0_11, %c0_12, %c0_13], %30 {strides = array<i32>} : memref<1x4x1xf32, #tpu.memory_space<vmem>>, vector<1x4x1xf32>,
    %c0_14 = arith.constant 0 : index
    %c0_15 = arith.constant 0 : index
    %c0_16 = arith.constant 0 : index
    %31 = vector.load %arg5[%c0_14, %c0_15, %c0_16] : memref<1x4x1xf32, #tpu.memory_space<vmem>>, vector<1x4x1xf32>
    %32 = vector.shape_cast %31 : vector<1x4x1xf32> to vector<4x1xf32>
    %cst_17 = arith.constant dense<0.000000e+00> : vector<4xf32>
    %33 = vector.multi_reduction <add>, %21, %cst_17 [1] : vector<4x256xf32> to vector<4xf32>
    %34 = vector.shape_cast %33 : vector<4xf32> to vector<4x1xf32>
    %35 = arith.addf %32, %34 : vector<4x1xf32>
    %c0_18 = arith.constant 0 : index
    %c0_19 = arith.constant 0 : index
    %c0_20 = arith.constant 0 : index
    %36 = vector.load %arg5[%c0_18, %c0_19, %c0_20] : memref<1x4x1xf32, #tpu.memory_space<vmem>>, vector<1x4x1xf32>
    %37 = vector.shape_cast %36 : vector<1x4x1xf32> to vector<4x1xf32>
    %38 = vector.shape_cast %35 : vector<4x1xf32> to vector<1x4x1xf32>
    tpu.vector_store %arg5[%c0_18, %c0_19, %c0_20], %38 {strides = array<i32>} : memref<1x4x1xf32, #tpu.memory_space<vmem>>, vector<1x4x1xf32>,
    %c0_21 = arith.constant 0 : index
    %c0_22 = arith.constant 0 : index
    %c0_23 = arith.constant 0 : index
    %39 = vector.load %arg6[%c0_21, %c0_22, %c0_23] : memref<1x4x1xf32, #tpu.memory_space<vmem>>, vector<1x4x1xf32>
    %40 = vector.shape_cast %39 : vector<1x4x1xf32> to vector<4x1xf32>
    %41 = arith.mulf %16, %16 : vector<4x256xf32>
    %cst_24 = arith.constant dense<0.000000e+00> : vector<4xf32>
    %42 = vector.multi_reduction <add>, %41, %cst_24 [1] : vector<4x256xf32> to vector<4xf32>
    %43 = vector.shape_cast %42 : vector<4xf32> to vector<4x1xf32>
    %44 = arith.addf %40, %43 : vector<4x1xf32>
    %c0_25 = arith.constant 0 : index
    %c0_26 = arith.constant 0 : index
    %c0_27 = arith.constant 0 : index
    %45 = vector.load %arg6[%c0_25, %c0_26, %c0_27] : memref<1x4x1xf32, #tpu.memory_space<vmem>>, vector<1x4x1xf32>
    %46 = vector.shape_cast %45 : vector<1x4x1xf32> to vector<4x1xf32>
    %47 = vector.shape_cast %44 : vector<4x1xf32> to vector<1x4x1xf32>
    tpu.vector_store %arg6[%c0_25, %c0_26, %c0_27], %47 {strides = array<i32>} : memref<1x4x1xf32, #tpu.memory_space<vmem>>, vector<1x4x1xf32>,
    return
  }
  func.func @transform_0(%arg0: i32, %arg1: i32) -> (i32, i32, i32) {
    %c0_i32 = arith.constant 0 : i32
    %c0_i32_0 = arith.constant 0 : i32
    return %arg0, %c0_i32, %arg1 : i32, i32, i32
  }
  func.func @transform_1(%arg0: i32, %arg1: i32) -> (i32, i32, i32) {
    %c0_i32 = arith.constant 0 : i32
    %c0_i32_0 = arith.constant 0 : i32
    return %arg0, %c0_i32, %arg1 : i32, i32, i32
  }
  func.func @transform_2(%arg0: i32, %arg1: i32) -> (i32, i32, i32) {
    %c0_i32 = arith.constant 0 : i32
    %c0_i32_0 = arith.constant 0 : i32
    %c0_i32_1 = arith.constant 0 : i32
    return %arg0, %c0_i32, %c0_i32_0 : i32, i32, i32
  }
  func.func @transform_3(%arg0: i32, %arg1: i32) -> (i32, i32, i32) {
    %c0_i32 = arith.constant 0 : i32
    %c0_i32_0 = arith.constant 0 : i32
    %c0_i32_1 = arith.constant 0 : i32
    return %arg0, %c0_i32, %c0_i32_0 : i32, i32, i32
  }
  func.func @transform_4(%arg0: i32, %arg1: i32) -> (i32, i32, i32) {
    %c0_i32 = arith.constant 0 : i32
    %c0_i32_0 = arith.constant 0 : i32
    %c0_i32_1 = arith.constant 0 : i32
    return %arg0, %c0_i32, %c0_i32_0 : i32, i32, i32
  }
}

</mosaic_0001>

<bundles_post_ra>
// kernel: tpu_custom_call.1
= control target key start
LH: loop header
LB: loop body
LE: loop exit
PB: predicated region body
PF: predicated region fallthrough
CT: control target
= control target key end

     0   :  { %10 = vsyncpa [#allocation3], 0  ;;  %s1011_s0 = inlined_call_operand.hbm [shape: f32[2,4,256], index: 0, kind: input, shape index: {}]   ;;  %s1012_s1 = inlined_call_operand.hbm [shape: s32[2,1,256], index: 1, kind: input, shape index: {}]   ;;  %s1013_s2 = inlined_call_operand.vmem [shape: f32[2,4,1], index: 2, kind: output, shape index: {0}]   ;;  %s1014_s3 = inlined_call_operand.vmem [shape: f32[2,4,1], index: 3, kind: output, shape index: {1}]   ;;  %s1015_s4 = inlined_call_operand.vmem [shape: f32[2,4,1], index: 4, kind: output, shape index: {2}]  }
   0x1   :  { %12 = vsyncpa [#allocation3 + $0x1], 0 }
   0x2   :  { %13 = vsyncpa [#allocation5], 0 }
   0x3   :  { %15 = vsyncpa [#allocation5 + $0x1], 0  ;;  %s805_s15 = smov 0   ;;  %s807_s16 = smov 0  }
   0x4   :  { %s809_s17 = smov 0   ;;  %s811_s18 = smov 0  }
   0x5   :  { %s813_s19 = smov 0   ;;  %s815_s20 = smov 0  }
   0x6 LB: > { %s571_s21 = sadd.s32 4294967295, %s775_s20   ;;  %s33_s22 = sadd.s32 1, %s771_s19  ;;  %s775_s20 = sphi %s815_s20, %s21_s20   ;;  %s771_s19 = sphi %s813_s19, %s1029_s19   ;;  %s767_s18 = sphi %s811_s18, %s1028_s18   ;;  %s763_s17 = sphi %s809_s17, %s1027_s17   ;;  %s759_s16 = sphi %s807_s16, %s1026_s16   ;;  %s755_s15 = sphi %s805_s15, %s1025_s15  }
   0x7   : > { %p35_p0 = scmp.ge.s32.totalorder %s33_s22, 2  ;;  %s42_s23 = sadd.s32 1, %s763_s17 }
   0x8   : > { %p49_p1 = scmp.ne.s32.totalorder %s763_s17, %s759_s16  ;;  %p50_p2 = scmp.eq.s32.totalorder %s775_s20, 0 }
   0x9   : > { %s1031_s22 = smov (%p35_p0, %s33_s22), 0  ;;  %p55_p4 = scmp.ne.s32.totalorder %s759_s16, %s755_s15 }
   0xa   : > { %p841_p3 = por %p50_p2, %p49_p1  ;;  %s37_s25 = ssub.s32 %s771_s19, %s1031_s22 }
   0xb   : > { %p56_p5 = scmp.eq.s32.totalorder %s571_s21, 0  ;;  %p40_p6 = scmp.eq.s32.totalorder %s37_s25, 0 }
   0xc   : > { %p604_p8 = scmp.lt.s32.totalorder %s775_s20, 2  ;;  %s857_s28 = sand.u32 1, %s763_s17  }
   0xd   : > { %p848_p7 = por %p56_p5, %p55_p4  ;;  %s591_s29 = sshll.u32 %s771_s19, 7 }
   0xe   : > { %s854_s27 = scalar_select %p40_p6, %s763_s17, %s42_s23  }
   0xf   : > { %s1018_s26 = scalar_select %p848_p7, 1, 0 }
  0x10   : > { %s575_s30 = sshll.u32 %s857_s28, 3  ;;  %s864_s7 = scalar_lea.hbm %s1011_s0, %s591_s29 }
  0x11   : > { %s189_s8 = scalar_lea.vmem [#allocation2], %s575_s30  ;;  %p868_p9 = pnand %p604_p8, %p841_p3 }
  0x12   : > { %s199_s9 = sshll.u32 %s189_s8, 4  ;;  %s186_s11 = scalar_lea.sflag [#allocation3], %s857_s28  ;;  %s872_s9 = int_to_ptr.vmem [resolvable:$true] %s199_s9 }
  0x13   : > { %s661_s12 = scalar_lea.hbm %s864_s7, 128  ;;  %p663_p13 = pneg %p868_p9 }
  0x14   : > { %p662_p12 = scmp.ne.s32.totalorder %s864_s7, %s661_s12  ;;  %s666_s15 = scalar_lea.hbm %s1011_s0, 256 }
  0x15   : > { %p667_p2 = scmp.lt.u32.totalorder %s864_s7, %s1011_s0  ;;  %p668_p3 = scmp.lt.u32.totalorder %s666_s15, %s661_s12 }
  0x16   : > { %p664_p0 = pnand %p663_p13, %p662_p12  ;;  %p670_p5 = scmp.lt.u32.totalorder %s661_s12, %s864_s7 }
  0x17   : > { %p669_p4 = por %p668_p3, %p667_p2 }
  0x18   : > { %p665_p1 = pneg %p664_p0 }
  0x19   : > { %p671_p6 = por %p670_p5, %p669_p4 }
  0x1b   : > { %p672_p8 = pnand %p671_p6, %p665_p1 }
  0x1d   : > { %675 = shalt.err (!%p672_p8)
}
  0x1e   : > { %s676_s24 = scalar_lea.vmem %s872_s9, 128  ;;  %s777_s25 = smov [#allocation2]  }
  0x1f   : > { %p677_p12 = scmp.ne.s32.totalorder %s872_s9, %s676_s24  ;;  %s681_s29 = sshll.u32 %s777_s25, 4  ;;  %s682_s29 = int_to_ptr.vmem [resolvable:$false] %s681_s29 }
  0x20   : > { %s683_s30 = scalar_lea.vmem %s682_s29, 256  ;;  %p684_p11 = scmp.lt.s32.totalorder %s872_s9, %s682_s29 }
  0x21   : > { %p679_p0 = pnand %p677_p12, %p663_p13  ;;  %p685_p2 = scmp.lt.s32.totalorder %s683_s30, %s676_s24 }
  0x23   : > { %p680_p10 = pneg %p679_p0  ;;  %p686_p3 = por %p685_p2, %p684_p11 }
  0x25   : > { %p687_p4 = pnand %p686_p3, %p680_p10 }
  0x27   : > { %690 = shalt.err (!%p687_p4)
}
  0x28   : > { %600 = dma.hbm_to_vmem [thread:$0]  (!%p868_p9), %s864_s7, 128, %s872_s9, %s186_s11  }
  0x29   : > { %p1020_p1 = scmp.lt.s32.totalorder %s775_s20, 3  ;;  %p1021_p5 = scmp.ge.s32.totalorder %s775_s20, 1 }
  0x2a   : > { %s578_s6 = sshll.u32 %s857_s28, 1  ;;  %s592_s8 = sshll.u32 %s771_s19, 5 }
  0x2b   : > { %p906_p6 = pnand %p1021_p5, %p1020_p1  ;;  %s915_s14 = scalar_lea.hbm %s1012_s1, %s592_s8 }
  0x2c   : > { %s210_s15 = scalar_lea.vmem [#allocation4], %s578_s6  ;;  %s207_s7 = scalar_lea.sflag [#allocation5], %s857_s28 }
  0x2d   : > { %s1022_s5 = scalar_select %p906_p6, 1, 0 }
  0x2e   : > { %s220_s21 = sshll.u32 %s210_s15, 4  ;;  %s691_s9 = scalar_lea.hbm %s915_s14, 32  ;;  %s221_s21 = int_to_ptr.vmem [resolvable:$true] %s220_s21 }
  0x2f   : > { %p692_p10 = scmp.ne.s32.totalorder %s915_s14, %s691_s9  ;;  %s696_s24 = scalar_lea.hbm %s1012_s1, 64 }
  0x30   : > { %p697_p12 = scmp.lt.u32.totalorder %s915_s14, %s1012_s1  ;;  %p698_p0 = scmp.lt.u32.totalorder %s696_s24, %s691_s9 }
  0x31   : > { %p694_p11 = pnand %p692_p10, %p663_p13  ;;  %p700_p3 = scmp.lt.u32.totalorder %s691_s9, %s915_s14 }
  0x32   : > { %p699_p2 = por %p698_p0, %p697_p12 }
  0x33   : > { %p695_p8 = pneg %p694_p11 }
  0x34   : > { %p701_p4 = por %p700_p3, %p699_p2 }
  0x36   : > { %p702_p1 = pnand %p701_p4, %p695_p8 }
  0x38   : > { %705 = shalt.err (!%p702_p1)
}
  0x39   : > { %s706_s28 = scalar_lea.vmem %s221_s21, 32  ;;  %s778_s30 = smov [#allocation4]  }
  0x3a   : > { %p707_p5 = scmp.ne.s32.totalorder %s221_s21, %s706_s28  ;;  %s711_s6 = sshll.u32 %s778_s30, 4  ;;  %s712_s6 = int_to_ptr.vmem [resolvable:$false] %s711_s6 }
  0x3b   : > { %s713_s8 = scalar_lea.vmem %s712_s6, 64  ;;  %p714_p7 = scmp.lt.s32.totalorder %s221_s21, %s712_s6 }
  0x3c   : > { %p709_p10 = pnand %p707_p5, %p663_p13  ;;  %p715_p6 = scmp.lt.s32.totalorder %s713_s8, %s706_s28 }
  0x3e   : > { %p710_p11 = pneg %p709_p10  ;;  %p716_p0 = por %p715_p6, %p714_p7 }
  0x40   : > { %p717_p12 = pnand %p716_p0, %p710_p11 }
  0x42   : > { %720 = shalt.err (!%p717_p12)
}
  0x43   : > { %603 = dma.hbm_to_vmem [thread:$0]  (!%p868_p9), %s915_s14, 32, %s221_s21, %s207_s7  }
  0x44   : > { %p1023_p8 = scmp.ne.s32.totalorder %s1022_s5, 0 }
  0x45   : > { %s231_s12 = sand.u32 (!%p1023_p8), 1, %s759_s16   ;;  %p1024_p13 = scmp.ne.s32.totalorder (!%p1023_p8), %s1018_s26, 0 }
  0x46   : > { %229 = sbr.rel (%p1023_p8) target bundleno = 300 (0x12c), region = 28  ;;  %s582_s13 = sshll.u32 (!%p1023_p8), %s231_s12, 3 }
  0x47   : > { %s232_s15 = scalar_lea.sflag (!%p1023_p8), [#allocation3], %s231_s12  ;;  %s235_s9 = scalar_lea.vmem (!%p1023_p8), [#allocation2], %s582_s13 }
  0x4d   : > { %746 = dma.done.wait (%p1024_p13), %s232_s15, 128  }
  0x4e   : > { %748 = vsyncadd (%p1024_p13), %s232_s15, 4294967168  ;;  %s583_s11 = sshll.u32 %s231_s12, 1  ;;  %s241_s23 = scalar_lea.sflag [#allocation5], %s231_s12 }
  0x4f   : > { %s944_s10 = scalar_lea.vmem [#allocation4], %s583_s11 }
  0x50   : > { %750 = dma.done.wait (%p1024_p13), %s241_s23, 32  }
  0x51   : > { %752 = vsyncadd (%p1024_p13), %s241_s23, 4294967264  ;;  %p283_p7 = scmp.lt.s32.totalorder %s767_s18, 1  ;;  %vm299_vm0 = vcmask 3072   ;;  %vm308_vm1 = vcmask 1043456   ;;  %v779_v0 = vmov 0.0   ;;  %v303_v1 = vld [vmem:[%s235_s9] sm:$0xff]  ;;  %v354_v27 = vlaneseq }
  0x52   : > { %v306_v2 = vcombine.high %v303_v1, %v303_v1  ;;  %v309_v3 = vsel %vm308_vm1, %v303_v1, -inf  ;;  %v304_v39 = vld [vmem:[%s944_s10] sm:$0x3] }
  0x53   : > { %s1033_s18 = smov (!%p283_p7, %s767_s18), 1  ;;  %v310_v4 = vrot.slane %v309_v3, 4  ;;  %v355_v32 = vshrl.u32 %v354_v27, 7 }
  0x54   : > { %s952_s5 = sshll.u32 %s1033_s18, 2  ;;  %v316_v5 = vsel %vm308_vm1, %v306_v2, -inf }
  0x55   : > { %s958_s7 = scalar_lea.vmem %s1013_s2, %s952_s5  ;;  %v311_v6 = vmax.f32 %v309_v3, %v310_v4  ;;  %v317_v7 = vrot.slane %v316_v5, 4  ;;  %v358_v37 = vsub.s32 0, %v355_v32  ;;  %v362_v38 = vsub.s32 1, %v355_v32  ;;  %s294_s24 = scalar_lea.vmem %s1015_s4, %s952_s5 }
  0x56   : > { %300 = vst.msk [vmem:[%s958_s7] sm:$0xf] %vm299_vm0, %v779_v0  ;;  %s290_s28 = scalar_lea.vmem %s1014_s3, %s952_s5  ;;  %302 = vst.msk [vmem:[%s294_s24] sm:$0xf] %vm299_vm0, %v779_v0 }
  0x57   : > { %v312_v8 = vrot.slane %v311_v6, 2  ;;  %v318_v9 = vmax.f32 %v316_v5, %v317_v7  ;;  %v359_v41 = vrot.slane %v304_v39, %v358_v37  ;;  %v363_v42 = vrot.slane %v304_v39, %v362_v38  ;;  %301 = vst.msk [vmem:[%s290_s28] sm:$0xf] %vm299_vm0, %v779_v0 }
  0x59   : > { %v313_v10 = vmax.f32 %v311_v6, %v312_v8  ;;  %v319_v11 = vrot.slane %v318_v9, 2  ;;  %vm364_vm2 = vcmp.eq.s32.totalorder %v359_v41, %v355_v32  ;;  %vm365_vm3 = vcmp.eq.s32.totalorder %v363_v42, %v355_v32 }
  0x5a   : > { %v587_v44 = vsel %vm364_vm2, 1.0, %v779_v0  ;;  %v588_v45 = vsel %vm365_vm3, 1.0, %v779_v0 }
  0x5b   : > { %v314_v12 = vrot.slane %v313_v10, 1  ;;  %v320_v13 = vmax.f32 %v318_v9, %v319_v11  ;;  %v373_v48 = vcombine.low %v587_v44, %v588_v45  ;;  %v388_v58 = vsel %vm308_vm1, %v587_v44, 0.0 }
  0x5c   : > { %v389_v59 = vsel %vm308_vm1, %v588_v45, 0.0 }
  0x5d   : > { %v315_v14 = vmax.f32 %v313_v10, %v314_v12  ;;  %v321_v15 = vrot.slane %v320_v13, 1  ;;  %v390_v62 = vadd.f32 %v389_v59, %v388_v58  ;;  %v370_v63 = vld [vmem:[%s958_s7] sm:$0xf] }
  0x5e   : > { %v387_v6 = vld [vmem:[%s290_s28] sm:$0xf] }
  0x5f   : > { %v322_v16 = vmax.f32 %v320_v13, %v321_v15 }
  0x61   : > { %v325_v17 = vcombine.low %v315_v14, %v322_v16 }
  0x63   : > { %v327_v18 = vsub.f32 %v303_v1, %v325_v17  ;;  %v395_v1 = vld [vmem:[%s294_s24] sm:$0xf] }
  0x65   : > { %v328_v19 = vmul.f32 1.442695, %v327_v18 }
  0x67   : > { %655 = vpow2.f32 %v328_v19 }
  0x71   : > { %v656_v20 = vpop.eup %655 }
  0x72   : > { %v331_v21 = vcombine.high %v656_v20, %v656_v20  ;;  %v333_v22 = vsel %vm308_vm1, %v656_v20, 0.0 }
  0x73   : > { %v334_v23 = vrot.slane %v333_v22, 4 }
  0x74   : > { %v340_v24 = vsel %vm308_vm1, %v331_v21, 0.0 }
  0x75   : > { %v335_v25 = vadd.f32 %v334_v23, %v333_v22  ;;  %v341_v26 = vrot.slane %v340_v24, 4 }
  0x77   : > { %v336_v28 = vrot.slane %v335_v25, 2  ;;  %v342_v29 = vadd.f32 %v341_v26, %v340_v24 }
  0x79   : > { %v337_v30 = vadd.f32 %v336_v28, %v335_v25  ;;  %v343_v31 = vrot.slane %v342_v29, 2 }
  0x7b   : > { %v338_v33 = vrot.slane %v337_v30, 1  ;;  %v344_v34 = vadd.f32 %v343_v31, %v342_v29 }
  0x7d   : > { %v339_v35 = vadd.f32 %v338_v33, %v337_v30  ;;  %v345_v36 = vrot.slane %v344_v34, 1 }
  0x7f   : > { %v346_v40 = vadd.f32 %v345_v36, %v344_v34  ;;  %657 = vrcp.f32 %v339_v35 }
  0x81   : > { %659 = vrcp.f32 %v346_v40 }
  0x89   : > { %v658_v43 = vpop.eup %657 }
  0x8b   : > { %v660_v46 = vpop.eup %659 }
  0x8c   : > { %v351_v47 = vcombine.low %v658_v43, %v660_v46 }
  0x8e   : > { %v353_v49 = vmul.f32 %v656_v20, %v351_v47 }
  0x90   : > { %v375_v50 = vmul.f32 %v373_v48, %v353_v49  ;;  %v396_v51 = vmul.f32 %v353_v49, %v353_v49 }
  0x92   : > { %v377_v52 = vcombine.high %v375_v50, %v375_v50  ;;  %v379_v53 = vsel %vm308_vm1, %v375_v50, 0.0  ;;  %v398_v54 = vcombine.high %v396_v51, %v396_v51  ;;  %v400_v55 = vsel %vm308_vm1, %v396_v51, 0.0 }
  0x94   : > { %v380_v56 = vsel %vm308_vm1, %v377_v52, 0.0  ;;  %v401_v57 = vsel %vm308_vm1, %v398_v54, 0.0 }
  0x95   : > { %v381_v60 = vadd.f32 %v380_v56, %v379_v53  ;;  %v402_v61 = vadd.f32 %v401_v57, %v400_v55 }
  0x97   : > { %382 = vadd.xlane.f32.xlu0 %v381_v60  ;;  %403 = vadd.xlane.f32.xlu1 %v402_v61 }
  0x9b   : > { %391 = vadd.xlane.f32.xlu0 %v390_v62 }
 0x124   : > { %v383_v2 = vpop.xlane.xlu0 %382  ;;  %v404_v3 = vpop.xlane.xlu1 %403 }
 0x125   : > { %v384_v4 = vadd.f32 %v383_v2, %v370_v63  ;;  %v405_v5 = vadd.f32 %v404_v3, %v395_v1 }
 0x127   : > { %386 = vst.msk [vmem:[%s958_s7] sm:$0xf] %vm299_vm0, %v384_v4  ;;  %406 = vst.msk [vmem:[%s294_s24] sm:$0xf] %vm299_vm0, %v405_v5 }
 0x128   : > { %v392_v7 = vpop.xlane.xlu0 %391 }
 0x129   : > { %v393_v8 = vadd.f32 %v392_v7, %v387_v6 }
 0x12b   : > { %394 = vst.msk [vmem:[%s290_s28] sm:$0xf] %vm299_vm0, %v393_v8 }
 0x12c PF: > { %s21_s20 = sadd.s32 1, %s775_s20   ;;  %s1025_s15 = smov %s759_s16 }
 0x12d   : > { %p18_p9 = scmp.ge.s32.totalorder %s21_s20, 4   ;;  %s1026_s16 = smov %s763_s17 }
 0x12e   : > { %s1027_s17 = smov %s854_s27  ;;  %s1028_s18 = smov %s771_s19 }
 0x12f   : > { %s1029_s19 = smov %s1031_s22  ;;  %20 = sbr.rel (!%p18_p9) target bundleno = 6 (0x6), region = 109 }
 0x136   :  { %454 = vsyncpa [#allocation3], 1 }
 0x137   :  { %456 = vsyncpa [#allocation3 + $0x1], 1 }
 0x138   :  { %457 = vsyncpa [#allocation5], 1 }
 0x139   :  { %459 = vsyncpa [#allocation5 + $0x1], 1 }

</bundles_post_ra>
